<compile_context>
chip_gen: v6e
topology: v6e:2x2x1
jax: 0.10.0
libtpu: 0.0.40
codegen_flags: <defaults>
</compile_context>

<pallas_src>
import functools

import jax
import jax.numpy as jnp
from jax.experimental import pallas as pl
from jax.experimental.pallas import tpu as pltpu


def _round_up(x, m):
    return ((x + m - 1) // m) * m


def net1_kernel(x_ref, w1_ref, b1_ref, w2_ref, b2_ref, o_ref):
    # fc1 on the MXU: (TB, D) bf16 @ (D, Hp) bf16 -> f32 accumulation.
    h = jnp.dot(x_ref[...], w1_ref[...], preferred_element_type=jnp.float32)
    # Bias + ReLU on the VPU in f32.
    h = jnp.maximum(h + b1_ref[...], 0.0)
    # Second layer as VPU multiply + XLU lane reduction (see header).
    y = jnp.sum(h * w2_ref[...], axis=-1, keepdims=True)          # (TB, 1) f32
    o_ref[...] = (y + b2_ref[...]).astype(o_ref.dtype)


@functools.partial(jax.jit, static_argnames=("block_b",))
def net1_forward(x, w1, b1, w2, b2, *, block_b=512):
    """x: (B, STATE_DIM+ACTION_DIM) f32; w1: (D, H); b1: (1, H); w2: (H, 1);
    b2: (1, 1).  Returns (B, 1) f32."""
    B, D = x.shape
    H = w1.shape[1]

    # ---- Pad the hidden dim to the 128-lane boundary (exact, see header). ----
    Hp = _round_up(H, 128)
    w1p = jnp.zeros((D, Hp), jnp.bfloat16).at[:, :H].set(w1.astype(jnp.bfloat16))
    b1p = jnp.zeros((1, Hp), jnp.float32).at[:, :H].set(
        b1.reshape(1, H).astype(jnp.float32))
    w2p = jnp.zeros((1, Hp), jnp.float32).at[:, :H].set(
        w2.reshape(1, H).astype(jnp.float32))
    b2p = b2.reshape(1, 1).astype(jnp.float32)

    # ---- bf16 for the memory-dominant x stream (accumulation stays f32). ----
    xb = x.astype(jnp.bfloat16)

    # ---- Tile the batch; pad it up to a multiple of the tile. ----
    bb = min(block_b, _round_up(B, 8))       # sublane-aligned batch tile
    Bp = _round_up(B, bb)
    if Bp != B:
        xb = jnp.pad(xb, ((0, Bp - B), (0, 0)))
    nb = Bp // bb

    out = pl.pallas_call(
        net1_kernel,
        out_shape=jax.ShapeDtypeStruct((Bp, 1), jnp.float32),
        grid_spec=pltpu.PrefetchScalarGridSpec(
            num_scalar_prefetch=0,
            grid=(nb,),
            in_specs=[
                pl.BlockSpec((bb, D), lambda i: (i, 0)),   # x tile (streamed)
                pl.BlockSpec((D, Hp), lambda i: (0, 0)),   # w1 (resident)
                pl.BlockSpec((1, Hp), lambda i: (0, 0)),   # b1
                pl.BlockSpec((1, Hp), lambda i: (0, 0)),   # w2 as a row
                pl.BlockSpec((1, 1), lambda i: (0, 0)),    # b2
            ],
            out_specs=pl.BlockSpec((bb, 1), lambda i: (i, 0)),
        ),
        compiler_params=pltpu.CompilerParams(
            dimension_semantics=("parallel",),
            # Way above actual use (<2 MiB at bb=512); explicit so v5e's 16 MiB
            # scoped default is never the limiter and v7x's 64 MiB is respected.
            vmem_limit_bytes=32 * 1024 * 1024,
        ),
    )(xb, w1p, b1p, w2p, b2p)

    return out[:B]


def init_params(key, state_dim, action_dim, hidden=100):
    """Deterministic synthetic init mirroring Net1.__init__ distributions."""
    in_dim = state_dim + action_dim
    k1, k2, k3, k4 = jax.random.split(key, 4)
    # fc1.weight ~ N(0, 0.1), stored transposed as (in, out)
    w1 = 0.1 * jax.random.normal(k1, (in_dim, hidden), dtype=jnp.float32)
    bound1 = 1.0 / jnp.sqrt(jnp.float32(in_dim))
    b1 = jax.random.uniform(k2, (1, hidden), dtype=jnp.float32,
                            minval=-bound1, maxval=bound1)
    # out.weight ~ N(0, 0.1), stored as (in, out)
    w2 = 0.1 * jax.random.normal(k3, (hidden, 1), dtype=jnp.float32)
    bound2 = 1.0 / jnp.sqrt(jnp.float32(hidden))
    b2 = jax.random.uniform(k4, (1, 1), dtype=jnp.float32,
                            minval=-bound2, maxval=bound2)
    return w1, b1, w2, b2


if __name__ == "__main__":
    STATE_DIM = 24
    ACTION_DIM = 8       # fc1 input dim = 32
    BATCH = 24           # not a multiple of the tile -> exercises batch padding
    BLOCK_B = 16         # 2 grid steps after padding to 32

    key = jax.random.PRNGKey(0)
    kx, kp = jax.random.split(key)
    x = jax.random.normal(kx, (BATCH, STATE_DIM + ACTION_DIM), dtype=jnp.float32)
    w1, b1, w2, b2 = init_params(kp, STATE_DIM, ACTION_DIM)

    out = net1_forward(x, w1, b1, w2, b2, block_b=BLOCK_B)
    out = jax.block_until_ready(out)
    assert out.shape == (BATCH, 1)

    # Reference 1: same bf16 rounding of x and w1 as the kernel (exact-product
    # bf16 MXU with f32 accumulation; layer 2 is full f32) -> tight tolerance.
    xb = x.astype(jnp.bfloat16).astype(jnp.float32)
    w1b = w1.astype(jnp.bfloat16).astype(jnp.float32)
    h_ref = jnp.maximum(
        jnp.dot(xb, w1b, precision=jax.lax.Precision.HIGHEST) + b1, 0.0)
    ref_bf16 = jnp.sum(h_ref * w2.reshape(1, -1), axis=-1, keepdims=True) + b2
    assert jnp.allclose(out, ref_bf16, atol=2e-3, rtol=2e-3), \
        float(jnp.max(jnp.abs(out - ref_bf16)))

    # Reference 2: pure f32 module semantics -> looser tolerance (bf16 input
    # rounding only).
    h_f32 = jnp.maximum(
        jnp.dot(x, w1, precision=jax.lax.Precision.HIGHEST) + b1, 0.0)
    ref_f32 = jnp.dot(h_f32, w2, precision=jax.lax.Precision.HIGHEST) + b2
    assert jnp.allclose(out, ref_f32, atol=5e-2, rtol=5e-2), \
        float(jnp.max(jnp.abs(out - ref_f32)))

    print("KERNEL_OK")
</pallas_src>

<mosaic_0001>
module attributes {stable_mosaic.version = 11 : i64} {
  func.func @net1_kernel(%arg0: i32, %arg1: memref<16x32xbf16, #tpu.memory_space<vmem>>, %arg2: memref<32x128xbf16, #tpu.memory_space<vmem>>, %arg3: memref<1x128xf32, #tpu.memory_space<vmem>>, %arg4: memref<1x128xf32, #tpu.memory_space<vmem>>, %arg5: memref<1x1xf32, #tpu.memory_space<vmem>>, %arg6: memref<16x1xf32, #tpu.memory_space<vmem>>) attributes {dimension_semantics = [#tpu.dimension_semantics<parallel>], iteration_bounds = array<i64: 2>, scalar_prefetch = 0 : i64, scratch_operands = 0 : i64, tpu.core_type = #tpu.core_type<tc>, window_params = [{transform_indices = @transform_0, window_bounds = array<i64: 16, 32>}, {pipeline_mode = #tpu.pipeline_mode<synchronous>, transform_indices = @transform_1, window_bounds = array<i64: 32, 128>}, {pipeline_mode = #tpu.pipeline_mode<synchronous>, transform_indices = @transform_2, window_bounds = array<i64: 1, 128>}, {pipeline_mode = #tpu.pipeline_mode<synchronous>, transform_indices = @transform_3, window_bounds = array<i64: 1, 128>}, {pipeline_mode = #tpu.pipeline_mode<synchronous>, transform_indices = @transform_4, window_bounds = array<i64: 1, 1>}, {transform_indices = @transform_5, window_bounds = array<i64: 16, 1>}]} {
    %c0 = arith.constant 0 : index
    %c0_0 = arith.constant 0 : index
    %0 = vector.load %arg1[%c0, %c0_0] : memref<16x32xbf16, #tpu.memory_space<vmem>>, vector<16x32xbf16>
    %c0_1 = arith.constant 0 : index
    %c0_2 = arith.constant 0 : index
    %1 = vector.load %arg2[%c0_1, %c0_2] : memref<32x128xbf16, #tpu.memory_space<vmem>>, vector<32x128xbf16>
    %cst = arith.constant dense<0.000000e+00> : vector<16x128xf32>
    %2 = tpu.matmul %0, %1, %cst {dimension_numbers = #tpu.dot_dimension_numbers<[1], [0], [0], [1], [0, 0, 1, 1], [], []>} : vector<16x32xbf16>, vector<32x128xbf16>, vector<16x128xf32> -> vector<16x128xf32>
    %c0_3 = arith.constant 0 : index
    %c0_4 = arith.constant 0 : index
    %3 = vector.load %arg3[%c0_3, %c0_4] : memref<1x128xf32, #tpu.memory_space<vmem>>, vector<1x128xf32>
    %4 = vector.broadcast %3 : vector<1x128xf32> to vector<16x128xf32>
    %5 = arith.addf %2, %4 : vector<16x128xf32>
    %cst_5 = arith.constant 0.000000e+00 : f32
    %6 = vector.broadcast %cst_5 : f32 to vector<16x128xf32>
    %7 = arith.maximumf %5, %6 : vector<16x128xf32>
    %c0_6 = arith.constant 0 : index
    %c0_7 = arith.constant 0 : index
    %8 = vector.load %arg4[%c0_6, %c0_7] : memref<1x128xf32, #tpu.memory_space<vmem>>, vector<1x128xf32>
    %9 = vector.broadcast %8 : vector<1x128xf32> to vector<16x128xf32>
    %10 = arith.mulf %7, %9 : vector<16x128xf32>
    %cst_8 = arith.constant dense<0.000000e+00> : vector<16xf32>
    %11 = vector.multi_reduction <add>, %10, %cst_8 [1] : vector<16x128xf32> to vector<16xf32>
    %12 = vector.shape_cast %11 : vector<16xf32> to vector<16x1xf32>
    %c0_9 = arith.constant 0 : index
    %c0_10 = arith.constant 0 : index
    %13 = vector.load %arg5[%c0_9, %c0_10] : memref<1x1xf32, #tpu.memory_space<vmem>>, vector<1x1xf32>
    %14 = vector.broadcast %13 : vector<1x1xf32> to vector<16x1xf32>
    %15 = arith.addf %12, %14 : vector<16x1xf32>
    %c0_11 = arith.constant 0 : index
    %c0_12 = arith.constant 0 : index
    %16 = vector.load %arg6[%c0_11, %c0_12] : memref<16x1xf32, #tpu.memory_space<vmem>>, vector<16x1xf32>
    tpu.vector_store %arg6[%c0_11, %c0_12], %15 {strides = array<i32>} : memref<16x1xf32, #tpu.memory_space<vmem>>, vector<16x1xf32>,
    return
  }
  func.func @transform_0(%arg0: i32) -> (i32, i32) {
    %c0_i32 = arith.constant 0 : i32
    %c0_i32_0 = arith.constant 0 : i32
    return %arg0, %c0_i32 : i32, i32
  }
  func.func @transform_1(%arg0: i32) -> (i32, i32) {
    %c0_i32 = arith.constant 0 : i32
    %c0_i32_0 = arith.constant 0 : i32
    %c0_i32_1 = arith.constant 0 : i32
    return %c0_i32, %c0_i32_0 : i32, i32
  }
  func.func @transform_2(%arg0: i32) -> (i32, i32) {
    %c0_i32 = arith.constant 0 : i32
    %c0_i32_0 = arith.constant 0 : i32
    %c0_i32_1 = arith.constant 0 : i32
    return %c0_i32, %c0_i32_0 : i32, i32
  }
  func.func @transform_3(%arg0: i32) -> (i32, i32) {
    %c0_i32 = arith.constant 0 : i32
    %c0_i32_0 = arith.constant 0 : i32
    %c0_i32_1 = arith.constant 0 : i32
    return %c0_i32, %c0_i32_0 : i32, i32
  }
  func.func @transform_4(%arg0: i32) -> (i32, i32) {
    %c0_i32 = arith.constant 0 : i32
    %c0_i32_0 = arith.constant 0 : i32
    %c0_i32_1 = arith.constant 0 : i32
    return %c0_i32, %c0_i32_0 : i32, i32
  }
  func.func @transform_5(%arg0: i32) -> (i32, i32) {
    %c0_i32 = arith.constant 0 : i32
    %c0_i32_0 = arith.constant 0 : i32
    return %arg0, %c0_i32 : i32, i32
  }
}

</mosaic_0001>

<bundles_post_ra>
// kernel: net1_forward.1
= control target key start
LH: loop header
LB: loop body
LE: loop exit
PB: predicated region body
PF: predicated region fallthrough
CT: control target
= control target key end

     0   :  { %s474_s20 = smov 0   ;;  %s503_s0 = inlined_call_operand.vmem [shape: bf16[32,32], index: 0, kind: input, shape index: {}]   ;;  %s504_s1 = inlined_call_operand.vmem [shape: bf16[32,128], index: 1, kind: input, shape index: {}]   ;;  %s505_s2 = inlined_call_operand.vmem [shape: f32[1,128], index: 2, kind: input, shape index: {}]   ;;  %s506_s3 = inlined_call_operand.vmem [shape: f32[1,128], index: 3, kind: input, shape index: {}]   ;;  %s507_s4 = inlined_call_operand.<no memory space> [shape: f32[1,1], index: 4, kind: input, shape index: {}]   ;;  %s508_s5 = inlined_call_operand.vmem [shape: f32[32,1], index: 5, kind: output, shape index: {}]  }
   0x1   :  { %v10_v0 = vstv %s507_s4 }
   0x2   :  { %11 = vst [vmem:[#allocation2] sm:$0x1] %v10_v0 }
   0x3 LB: > { %s389_s21 = sadd.s32 4294967295, %s437_s20   ;;  %p393_p0 = scmp.ge.s32.totalorder %s437_s20, 1  ;;  %s437_s20 = sphi %s474_s20, %s17_s20  }
   0x4   : > { %p190_p1 = scmp.lt.s32.totalorder %s437_s20, 3 }
   0x6   : > { %p191_p2 = pnand %p393_p0, %p190_p1 }
   0x7   : > { %s394_s25 = sshll.u32 (!%p191_p2), %s389_s21, 1 }
   0x8   : > { %194 = sbr.rel (%p191_p2) target bundleno = 366 (0x16e), region = 40  ;;  %p219_p3 = scmp.lt.s32.totalorder (!%p191_p2), %s394_s25, 3 }
   0xd   : > { %v428_v1 = vld [vmem:[%s504_s1 + $0x8] sm:$0xff]   ;;  %v439_v2 = vmov 0.0   ;;  %v429_v3 = vld [vmem:[%s504_s1] sm:$0xff]   ;;  %vm440_vm0 = vmmov 0   ;;  %s510_s25 = smov (!%p219_p3, %s394_s25), 3  ;;  %vm261_vm1 = vcmask 261120  }
   0xe   : > { %410 = vmatprep.subr.bf16.mxu0 %v439_v2  ;;  %414 = vmatprep.mubr.msk.bf16.mxu0 %vm440_vm0, %v439_v2  ;;  %s395_s26 = sshll.u32 %s510_s25, 2  ;;  %v398_v5 = vld [vmem:[%s505_s2] ss:$0 sm:$0xff]  ;;  %s397_s9 = sshll.u32 %s510_s25, 3  ;;  %vm330_vm2 = vcmask 7168  }
   0xf   : > { %411 = vmatpush3.bf16.msra.mxu0 %v428_v1  ;;  %s222_s29 = scalar_lea.vmem %s503_s0, %s395_s26  ;;  %v403_v9 = vld [vmem:[%s506_s3] ss:$0 sm:$0xff]  ;;  %s228_s12 = scalar_lea.vmem %s508_s5, %s397_s9 }
  0x10   : > { %412 = vmatprep.subr.bf16.mxu0 %v439_v2  ;;  %v430_v4 = vld [vmem:[%s222_s29] sm:$0xff]  }
  0x11   : > { %v404_v17 = vld [vmem:[#allocation2] ss:$0 sm:$0xff] }
  0x13   : > { %413 = vmatpush3.bf16.msra.mxu0 %v429_v3 }
  0x16   : > { %415 = vmatmul.mubr.msk.bf16.vlgmr.msra.gmra.mxu0 %vm261_vm1, %v430_v4 }
  0xd6   : > { %v299_v6 = vpop.f32.mrf.mxu0 }
  0xd7   : > { %v300_v7 = vadd.f32 %v398_v5, %v299_v6 }
  0xd8   : > { %v416_v8 = vpop.f32.mrf.mxu0 }
  0xd9   : > { %v306_v10 = vmax.f32 %v300_v7, 0.0 }
  0xda   : > { %v302_v11 = vpop.f32.mrf.mxu0 }
  0xdb   : > { %v303_v12 = vadd.f32 %v398_v5, %v302_v11  ;;  %v315_v13 = vmul.f32 %v403_v9, %v306_v10 }
  0xdc   : > { %v417_v14 = vpop.f32.mrf.mxu0 }
  0xdd   : > { %v307_v15 = vmax.f32 %v303_v12, 0.0  ;;  %317 = vadd.xlane.f32.xlu0 %v315_v13 }
  0xdf   : > { %v316_v16 = vmul.f32 %v403_v9, %v307_v15 }
  0xe1   : > { %319 = vadd.xlane.f32.xlu0 %v316_v16 }
 0x166   : > { %v318_v18 = vpop.xlane.xlu0 %317 }
 0x167   : > { %v328_v19 = vadd.f32 %v404_v17, %v318_v18 }
 0x169   : > { %331 = vst.msk [vmem:[%s228_s12] sm:$0xff] %vm330_vm2, %v328_v19 }
 0x16a   : > { %v320_v20 = vpop.xlane.xlu0 %319 }
 0x16b   : > { %v329_v21 = vadd.f32 %v404_v17, %v320_v20 }
 0x16d   : > { %332 = vst.msk [vmem:[%s228_s12 + $0x8] sm:$0xff] %vm330_vm2, %v329_v21 }
 0x16e PF: > { %s17_s20 = sadd.s32 1, %s437_s20  }
 0x16f   : > { %p14_p4 = scmp.ge.s32.totalorder %s17_s20, 4  }
 0x171   :  { %16 = sbr.rel (!%p14_p4) target bundleno = 3 (0x3), region = 70 }

</bundles_post_ra>
